<compile_context>
chip_gen: v7x
topology: tpu7x:2x2x1
jax: 0.10.0
libtpu: 0.0.40
codegen_flags: <defaults>
</compile_context>

<pallas_src>
import functools
import math

import jax
import jax.numpy as jnp
from jax.experimental import pallas as pl
from jax.experimental.pallas import tpu as pltpu

RADIUS = 3
TEMPERATURE = 0.1
COS_EPS = 1e-6


def _round_up(x, m):
    return ((x + m - 1) // m) * m


def _tree_reduce(op, xs):
    xs = list(xs)
    while len(xs) > 1:
        nxt = [op(xs[i], xs[i + 1]) for i in range(0, len(xs) - 1, 2)]
        if len(xs) % 2:
            nxt.append(xs[-1])
        xs = nxt
    return xs[0]


# ----------------------------------------------------------------------------
# Pallas kernel 1: fused ThickEncoder (backbone stand-in matmul + proj/BN/ReLU)
# ----------------------------------------------------------------------------
def encoder_kernel(x_ref, wstub_ref, wproj_ref, scale_ref, shift_ref, o_ref):
    # x: (TM, 48) bf16 rows = flattened N*h*w pixels.
    x = x_ref[...]
    # backbone stand-in: 48 -> 256, ReLU (MXU, f32 accumulate)
    h1 = jnp.dot(x, wstub_ref[...], preferred_element_type=jnp.float32)
    h1 = jnp.maximum(h1, 0.0)
    # proj 1x1 conv: 256 -> 256 (MXU), then folded BatchNorm + ReLU in f32
    y = jnp.dot(h1.astype(jnp.bfloat16), wproj_ref[...],
                preferred_element_type=jnp.float32)
    y = y * scale_ref[...] + shift_ref[...]
    o_ref[...] = jnp.maximum(y, 0.0).astype(o_ref.dtype)


def encoder(img, params):
    """ThickEncoder: backbone stand-in (patchify) + fused Pallas matmul pipeline."""
    # TODO(synk): the real ThickEncoder uses a pretrained timm resnet50 backbone
    # (features_only, stage-1 / stride-4 output); replaced by a deterministic
    # 4x4-patchify + linear stand-in producing the same stride-4 feature map.
    N, C, H, W = img.shape
    h, w = H // 4, W // 4
    x = img.reshape(N, C, h, 4, w, 4).transpose(0, 2, 4, 1, 3, 5)
    x = x.reshape(N * h * w, C * 16).astype(jnp.bfloat16)        # (M, 48)

    M, c_raw = x.shape
    c_mid = params['w_stub'].shape[1]
    out_ch = params['w_proj'].shape[1]

    TM = min(1024, _round_up(M, 16))          # row tile (bf16 sublane-friendly)
    M_pad = _round_up(M, TM)
    if M_pad != M:
        x = jnp.pad(x, ((0, M_pad - M), (0, 0)))

    y = pl.pallas_call(
        encoder_kernel,
        out_shape=jax.ShapeDtypeStruct((M_pad, out_ch), jnp.bfloat16),
        grid=(M_pad // TM,),
        in_specs=[
            pl.BlockSpec((TM, c_raw), lambda i: (i, 0)),
            pl.BlockSpec((c_raw, c_mid), lambda i: (0, 0)),
            pl.BlockSpec((c_mid, out_ch), lambda i: (0, 0)),
            pl.BlockSpec((1, out_ch), lambda i: (0, 0)),
            pl.BlockSpec((1, out_ch), lambda i: (0, 0)),
        ],
        out_specs=pl.BlockSpec((TM, out_ch), lambda i: (i, 0)),
        compiler_params=pltpu.CompilerParams(dimension_semantics=("parallel",)),
    )(x, params['w_stub'], params['w_proj'], params['bn_scale'], params['bn_shift'])

    return y[:M].reshape(N, h, w, out_ch)      # NHWC bf16 features


# ----------------------------------------------------------------------------
# Pallas kernel 2: cosine cost volume + softmax + expectation delta + confidence
# ----------------------------------------------------------------------------
def refiner_kernel(fL_ref, fR_ref, disp0_ref, disp_ref, conf_ref):
    # bf16 features from HBM; all VPU math in f32 (v5e has no bf16 VPU path).
    fL = fL_ref[0].astype(jnp.float32)        # (TH, w, C)
    fR = fR_ref[0].astype(jnp.float32)        # (TH, w, C)
    disp0 = disp0_ref[0]                      # (TH, w)

    # cosine normalization as cheap (TH, w) rsqrt maps (EUP), never normalize
    # the full feature maps.  max(norm, eps) == sqrt(max(sumsq, eps^2)).
    inv_nL = jax.lax.rsqrt(jnp.maximum(jnp.sum(fL * fL, axis=-1), COS_EPS * COS_EPS))
    inv_nR = jax.lax.rsqrt(jnp.maximum(jnp.sum(fR * fR, axis=-1), COS_EPS * COS_EPS))
    scale_L = inv_nL * (1.0 / TEMPERATURE)    # fold temperature into the scale

    # build_cosine_cost: torch.roll(fR, d, dims=-1) over width, cosine sim over C.
    logits = []
    for d in range(-RADIUS, RADIUS + 1):
        fRd = jnp.roll(fR, d, axis=1)                       # width roll (wraps)
        dot_d = jnp.sum(fL * fRd, axis=-1)                  # (TH, w)
        logits.append(dot_d * scale_L * jnp.roll(inv_nR, d, axis=1))

    # temperature softmax over the 7 hypotheses (tree reductions).
    m = _tree_reduce(jnp.maximum, logits)
    exps = [jnp.exp(l - m) for l in logits]
    denom = _tree_reduce(lambda a, b: a + b, exps)
    inv = pl.reciprocal(denom, approx=True)                 # EUP slot

    # expectation delta (skip the d == 0 term) and confidence (softmax max).
    acc = None
    for d, e in zip(range(-RADIUS, RADIUS + 1), exps):
        if d == 0:
            continue
        term = e * float(d)
        acc = term if acc is None else acc + term
    delta = acc * inv
    conf = _tree_reduce(jnp.maximum, exps) * inv

    disp_ref[0] = disp0 + delta
    conf_ref[0] = conf


def _row_tile(h, max_tile=32):
    if h <= max_tile:
        return h
    for t in range(max_tile, 7, -8):
        if h % t == 0:
            return t
    return h


def refine(fL, fR, disp0):
    N, h, w, C = fL.shape
    TH = _row_tile(h)
    grid = (N, h // TH)
    return pl.pallas_call(
        refiner_kernel,
        out_shape=(jax.ShapeDtypeStruct((N, h, w), jnp.float32),
                   jax.ShapeDtypeStruct((N, h, w), jnp.float32)),
        grid=grid,
        in_specs=[
            pl.BlockSpec((1, TH, w, C), lambda b, r: (b, r, 0, 0)),
            pl.BlockSpec((1, TH, w, C), lambda b, r: (b, r, 0, 0)),
            pl.BlockSpec((1, TH, w), lambda b, r: (b, r, 0)),
        ],
        out_specs=(pl.BlockSpec((1, TH, w), lambda b, r: (b, r, 0)),
                   pl.BlockSpec((1, TH, w), lambda b, r: (b, r, 0))),
        compiler_params=pltpu.CompilerParams(
            dimension_semantics=("parallel", "parallel")),
    )(fL, fR, disp0)


# ----------------------------------------------------------------------------
# Pallas kernel 3: Laplacian smoothing conv (zero padding), tiny separate pass
# ----------------------------------------------------------------------------
def smooth_kernel(d_ref, o_ref):
    x = d_ref[0]                              # (h, w)
    h, w = x.shape
    ri = jax.lax.broadcasted_iota(jnp.int32, (h, w), 0)   # hoisted once
    ci = jax.lax.broadcasted_iota(jnp.int32, (h, w), 1)
    up = jnp.where(ri < h - 1, jnp.roll(x, -1, axis=0), 0.0)   # x[i+1, j]
    dn = jnp.where(ri > 0, jnp.roll(x, 1, axis=0), 0.0)        # x[i-1, j]
    lt = jnp.where(ci < w - 1, jnp.roll(x, -1, axis=1), 0.0)   # x[i, j+1]
    rt = jnp.where(ci > 0, jnp.roll(x, 1, axis=1), 0.0)        # x[i, j-1]
    lap = up + dn + lt + rt - 4.0 * x
    o_ref[0] = x - 0.2 * lap


def smooth(disp):
    N, h, w = disp.shape
    return pl.pallas_call(
        smooth_kernel,
        out_shape=jax.ShapeDtypeStruct((N, h, w), jnp.float32),
        grid=(N,),
        in_specs=[pl.BlockSpec((1, h, w), lambda b: (b, 0, 0))],
        out_specs=pl.BlockSpec((1, h, w), lambda b: (b, 0, 0)),
        compiler_params=pltpu.CompilerParams(dimension_semantics=("parallel",)),
    )(disp)


# ----------------------------------------------------------------------------
# Plain-JAX glue: PyTorch-exact bilinear resizes (align_corners=False)
# ----------------------------------------------------------------------------
def down4_bilinear(x):
    """F.interpolate(scale_factor=0.25, bilinear, align_corners=False) on (N,H,W):
    src = 4*dst + 1.5 -> average of rows/cols (4d+1, 4d+2)."""
    xr = 0.5 * (x[:, 1::4, :] + x[:, 2::4, :])
    return 0.5 * (xr[:, :, 1::4] + xr[:, :, 2::4])


def up4_bilinear(x):
    """F.interpolate(scale_factor=4, bilinear, align_corners=False) on (N, h, w)."""
    def up_axis(arr, axis):
        n = arr.shape[axis]
        d = jnp.arange(4 * n, dtype=jnp.float32)
        s = jnp.maximum((d + 0.5) / 4.0 - 0.5, 0.0)
        i0 = jnp.clip(jnp.floor(s).astype(jnp.int32), 0, n - 1)
        i1 = jnp.clip(i0 + 1, 0, n - 1)
        w1 = s - i0.astype(jnp.float32)
        a0 = jnp.take(arr, i0, axis=axis)
        a1 = jnp.take(arr, i1, axis=axis)
        shape = [1] * arr.ndim
        shape[axis] = 4 * n
        w1 = w1.reshape(shape)
        return a0 * (1.0 - w1) + a1 * w1
    return up_axis(up_axis(x, 1), 2)


def cosine_refiner_forward(imgL, imgR, disp_full, params, smooth_flag=True):
    disp0 = down4_bilinear(disp_full[:, 0]) / 4.0        # (N, h, w)
    fL = encoder(imgL, params)
    fR = encoder(imgR, params)
    disp_q, conf = refine(fL, fR, disp0)
    if smooth_flag:
        disp_q = smooth(disp_q)
    disp_full_ref = up4_bilinear(disp_q) * 4.0
    conf_full = up4_bilinear(conf)
    return disp_full_ref[:, None], conf_full[:, None]    # back to NCHW (N,1,H,W)


# ----------------------------------------------------------------------------
# Deterministic parameter init + example run
# ----------------------------------------------------------------------------
def init_params(key, c_in=256, out_ch=256):
    k1, k2, k3, k4, k5, k6 = jax.random.split(key, 6)
    w_stub = 0.1 * jax.random.normal(k1, (48, c_in), jnp.float32)     # backbone stand-in
    w_proj = jax.random.normal(k2, (c_in, out_ch), jnp.float32) / math.sqrt(c_in)
    gamma = 1.0 + 0.1 * jax.random.normal(k3, (out_ch,), jnp.float32)
    beta = 0.1 * jax.random.normal(k4, (out_ch,), jnp.float32)
    r_mean = 0.1 * jax.random.normal(k5, (out_ch,), jnp.float32)
    r_var = jax.random.uniform(k6, (out_ch,), jnp.float32, 0.5, 1.5)
    scale = gamma / jnp.sqrt(r_var + 1e-5)
    shift = beta - r_mean * scale
    return dict(w_stub=w_stub.astype(jnp.bfloat16),      # bf16 MXU operands
                w_proj=w_proj.astype(jnp.bfloat16),
                bn_scale=scale.reshape(1, -1),           # BN applied in f32
                bn_shift=shift.reshape(1, -1))


if __name__ == "__main__":
    key = jax.random.PRNGKey(0)
    kp, ka, kb, kd = jax.random.split(key, 4)

    params = init_params(kp)

    N, H, W = 2, 32, 32
    imgL = jax.random.normal(ka, (N, 3, H, W), jnp.float32)
    imgR = jax.random.normal(kb, (N, 3, H, W), jnp.float32)
    disp_full = 10.0 * jax.random.uniform(kd, (N, 1, H, W), jnp.float32)

    disp_full_ref, conf_full = cosine_refiner_forward(imgL, imgR, disp_full, params,
                                                      smooth_flag=True)
    disp_full_ref = jax.block_until_ready(disp_full_ref)
    conf_full = jax.block_until_ready(conf_full)

    assert disp_full_ref.shape == (N, 1, H, W)
    assert conf_full.shape == (N, 1, H, W)
    assert bool(jnp.all(jnp.isfinite(disp_full_ref)))
    assert bool(jnp.all(jnp.isfinite(conf_full)))
    # confidences are softmax maxima (approx reciprocal -> loose upper tolerance)
    assert bool(jnp.all(conf_full > 0.0)) and bool(jnp.all(conf_full <= 1.0 + 1e-2))

    print("KERNEL_OK")
</pallas_src>

<mosaic_0001>
module attributes {stable_mosaic.version = 11 : i64} {
  func.func @encoder_kernel(%arg0: i32, %arg1: memref<128x48xbf16, #tpu.memory_space<vmem>>, %arg2: memref<48x256xbf16, #tpu.memory_space<vmem>>, %arg3: memref<256x256xbf16, #tpu.memory_space<vmem>>, %arg4: memref<1x256xf32, #tpu.memory_space<vmem>>, %arg5: memref<1x256xf32, #tpu.memory_space<vmem>>, %arg6: memref<128x256xbf16, #tpu.memory_space<vmem>>) attributes {dimension_semantics = [#tpu.dimension_semantics<parallel>], iteration_bounds = array<i64: 1>, scalar_prefetch = 0 : i64, scratch_operands = 0 : i64, tpu.core_type = #tpu.core_type<tc>, window_params = [{transform_indices = @transform_0, window_bounds = array<i64: 128, 48>}, {pipeline_mode = #tpu.pipeline_mode<synchronous>, transform_indices = @transform_1, window_bounds = array<i64: 48, 256>}, {pipeline_mode = #tpu.pipeline_mode<synchronous>, transform_indices = @transform_2, window_bounds = array<i64: 256, 256>}, {pipeline_mode = #tpu.pipeline_mode<synchronous>, transform_indices = @transform_3, window_bounds = array<i64: 1, 256>}, {pipeline_mode = #tpu.pipeline_mode<synchronous>, transform_indices = @transform_4, window_bounds = array<i64: 1, 256>}, {transform_indices = @transform_5, window_bounds = array<i64: 128, 256>}]} {
    %c0 = arith.constant 0 : index
    %c0_0 = arith.constant 0 : index
    %0 = vector.load %arg1[%c0, %c0_0] : memref<128x48xbf16, #tpu.memory_space<vmem>>, vector<128x48xbf16>
    %c0_1 = arith.constant 0 : index
    %c0_2 = arith.constant 0 : index
    %1 = vector.load %arg2[%c0_1, %c0_2] : memref<48x256xbf16, #tpu.memory_space<vmem>>, vector<48x256xbf16>
    %cst = arith.constant dense<0.000000e+00> : vector<128x256xf32>
    %2 = tpu.matmul %0, %1, %cst {dimension_numbers = #tpu.dot_dimension_numbers<[1], [0], [0], [1], [0, 0, 1, 1], [], []>} : vector<128x48xbf16>, vector<48x256xbf16>, vector<128x256xf32> -> vector<128x256xf32>
    %cst_3 = arith.constant 0.000000e+00 : f32
    %3 = vector.broadcast %cst_3 : f32 to vector<128x256xf32>
    %4 = arith.maximumf %2, %3 : vector<128x256xf32>
    %5 = arith.truncf %4 : vector<128x256xf32> to vector<128x256xbf16>
    %c0_4 = arith.constant 0 : index
    %c0_5 = arith.constant 0 : index
    %6 = vector.load %arg3[%c0_4, %c0_5] : memref<256x256xbf16, #tpu.memory_space<vmem>>, vector<256x256xbf16>
    %cst_6 = arith.constant dense<0.000000e+00> : vector<128x256xf32>
    %7 = tpu.matmul %5, %6, %cst_6 {dimension_numbers = #tpu.dot_dimension_numbers<[1], [0], [0], [1], [0, 0, 1, 1], [], []>} : vector<128x256xbf16>, vector<256x256xbf16>, vector<128x256xf32> -> vector<128x256xf32>
    %c0_7 = arith.constant 0 : index
    %c0_8 = arith.constant 0 : index
    %8 = vector.load %arg4[%c0_7, %c0_8] : memref<1x256xf32, #tpu.memory_space<vmem>>, vector<1x256xf32>
    %9 = vector.broadcast %8 : vector<1x256xf32> to vector<128x256xf32>
    %10 = arith.mulf %7, %9 : vector<128x256xf32>
    %c0_9 = arith.constant 0 : index
    %c0_10 = arith.constant 0 : index
    %11 = vector.load %arg5[%c0_9, %c0_10] : memref<1x256xf32, #tpu.memory_space<vmem>>, vector<1x256xf32>
    %12 = vector.broadcast %11 : vector<1x256xf32> to vector<128x256xf32>
    %13 = arith.addf %10, %12 : vector<128x256xf32>
    %cst_11 = arith.constant 0.000000e+00 : f32
    %14 = vector.broadcast %cst_11 : f32 to vector<128x256xf32>
    %15 = arith.maximumf %13, %14 : vector<128x256xf32>
    %16 = arith.truncf %15 : vector<128x256xf32> to vector<128x256xbf16>
    %c0_12 = arith.constant 0 : index
    %c0_13 = arith.constant 0 : index
    %17 = vector.load %arg6[%c0_12, %c0_13] : memref<128x256xbf16, #tpu.memory_space<vmem>>, vector<128x256xbf16>
    tpu.vector_store %arg6[%c0_12, %c0_13], %16 {strides = array<i32>} : memref<128x256xbf16, #tpu.memory_space<vmem>>, vector<128x256xbf16>,
    return
  }
  func.func @transform_0(%arg0: i32) -> (i32, i32) {
    %c0_i32 = arith.constant 0 : i32
    %c0_i32_0 = arith.constant 0 : i32
    return %arg0, %c0_i32 : i32, i32
  }
  func.func @transform_1(%arg0: i32) -> (i32, i32) {
    %c0_i32 = arith.constant 0 : i32
    %c0_i32_0 = arith.constant 0 : i32
    %c0_i32_1 = arith.constant 0 : i32
    return %c0_i32, %c0_i32_0 : i32, i32
  }
  func.func @transform_2(%arg0: i32) -> (i32, i32) {
    %c0_i32 = arith.constant 0 : i32
    %c0_i32_0 = arith.constant 0 : i32
    %c0_i32_1 = arith.constant 0 : i32
    return %c0_i32, %c0_i32_0 : i32, i32
  }
  func.func @transform_3(%arg0: i32) -> (i32, i32) {
    %c0_i32 = arith.constant 0 : i32
    %c0_i32_0 = arith.constant 0 : i32
    %c0_i32_1 = arith.constant 0 : i32
    return %c0_i32, %c0_i32_0 : i32, i32
  }
  func.func @transform_4(%arg0: i32) -> (i32, i32) {
    %c0_i32 = arith.constant 0 : i32
    %c0_i32_0 = arith.constant 0 : i32
    %c0_i32_1 = arith.constant 0 : i32
    return %c0_i32, %c0_i32_0 : i32, i32
  }
  func.func @transform_5(%arg0: i32) -> (i32, i32) {
    %c0_i32 = arith.constant 0 : i32
    %c0_i32_0 = arith.constant 0 : i32
    return %arg0, %c0_i32 : i32, i32
  }
}

</mosaic_0001>

<bundles_post_ra>
// kernel: tpu_custom_call.1
= control target key start
LH: loop header
LB: loop body
LE: loop exit
PB: predicated region body
PF: predicated region fallthrough
CT: control target
= control target key end

     0   :  { %10 = vsyncpa [#allocation3], 0  ;;  %s1305_s0 = inlined_call_operand.vmem [shape: bf16[128,48], index: 0, kind: input, shape index: {}]   ;;  %s1306_s1 = inlined_call_operand.vmem [shape: bf16[48,256], index: 1, kind: input, shape index: {}]   ;;  %s1307_s2 = inlined_call_operand.hbm [shape: bf16[256,256], index: 2, kind: input, shape index: {}]   ;;  %s1308_s3 = inlined_call_operand.vmem [shape: f32[1,256], index: 3, kind: input, shape index: {}]   ;;  %s1309_s4 = inlined_call_operand.vmem [shape: f32[1,256], index: 4, kind: input, shape index: {}]   ;;  %s1310_s5 = inlined_call_operand.hbm [shape: bf16[128,256], index: 5, kind: output, shape index: {}]  }
   0x1   :  { %11 = vsyncpa [#allocation4], 0  ;;  %s1104_s18 = smov [#allocation2]   ;;  %s1056_s22 = scalar_lea.hbm %s1307_s2, 4096 }
   0x2   :  { %s21_s19 = sshll.u32 %s1104_s18, 4  ;;  %p1057_p0 = scmp.ne.s32.totalorder %s1307_s2, %s1056_s22  ;;  %s22_s19 = int_to_ptr.vmem [resolvable:$true] %s21_s19 }
   0x3   :  { %p1060_p1 = scmp.lt.u32.totalorder %s1056_s22, %s1307_s2 }
   0x5   :  { %p1062_p2 = pnand %p1060_p1, %p1057_p0 }
   0x7   :  { %1065 = shalt.err (!%p1062_p2)
}
   0x8   :  { %s1066_s27 = scalar_lea.vmem %s22_s19, 4096  ;;  %p1071_p4 = scmp.lt.s32.totalorder %s22_s19, %s22_s19 }
   0x9   :  { %p1067_p3 = scmp.ne.s32.totalorder %s22_s19, %s1066_s27  ;;  %p1072_p5 = scmp.lt.s32.totalorder %s1066_s27, %s1066_s27 }
   0xb   :  { %p1073_p6 = por %p1072_p5, %p1071_p4 }
   0xd   :  { %p1074_p7 = pnand %p1073_p6, %p1067_p3 }
   0xf   :  { %1077 = shalt.err (!%p1074_p7)
}
  0x10   :  { %s1105_s28 = smov 128   ;;  %s1106_s29 = smov 8  }
  0x11   :  { %27 = dma.hbm_to_vmem [thread:$0]  %s1307_s2, 4096, %s22_s19, [#allocation3], %s1105_s28, %s1105_s28, %s1106_s29  }
  0x12   :  { %1100 = dma.done.wait [#allocation3], 4096  }
  0x13   :  { %1101 = vsyncadd [#allocation3], 4294963200  ;;  %v1107_v0 = vmov 0   ;;  %v991_v1 = vld [vmem:[%s1306_s1 + $0x4] ss:$8 sps:$4 sm:$0xff]   ;;  %vm128_vm0 = vcmask 392192  }
  0x14   :  { %185 = vmatprep.mubr.bf16.mxu0 %v1107_v0  ;;  %v993_v2 = vld [vmem:[%s1306_s1] ss:$8 sps:$4 sm:$0xff]   ;;  %153 = vmatprep.subr.bf16.mxu0 %v991_v1  ;;  %v994_v3 = vld [vmem:[%s1306_s1 + $0x14] ss:$8 sps:$4 sm:$0xff]   ;;  %v996_v4 = vld [vmem:[%s1306_s1 + $0x10] ss:$8 sps:$4 sm:$0xff]  }
  0x15   :  { %154 = vmatpush1.bf16.msra.mxu0 %v993_v2  ;;  %v997_v5 = vld [vmem:[%s1306_s1 + $0x24] ss:$8 sps:$4 sm:$0xff]   ;;  %v999_v6 = vld [vmem:[%s1306_s1 + $0x20] ss:$8 sps:$4 sm:$0xff]   ;;  %v1008_v8 = vld [vmem:[#allocation2] ss:$8 sps:$4 sm:$0xff]  }
  0x16   :  { %155 = vmatprep.subr.bf16.mxu0 %v994_v3  ;;  %v1000_v7 = vld [vmem:[%s1305_s0] sm:$0xff]   ;;  %v1010_v9 = vld [vmem:[#allocation2 + $0x4] ss:$8 sps:$4 sm:$0xff]   ;;  %v1001_v13 = vld [vmem:[%s1305_s0 + $0x8] sm:$0xff]  }
  0x17   :  { %v1013_v10 = vld [vmem:[#allocation2 + $0x14] ss:$8 sps:$4 sm:$0xff]   ;;  %v1011_v11 = vld [vmem:[#allocation2 + $0x10] ss:$8 sps:$4 sm:$0xff]   ;;  %954 = vmatprep.subr.bf16.mxu1 %v1010_v9  ;;  %v1016_v12 = vld [vmem:[#allocation2 + $0x24] ss:$8 sps:$4 sm:$0xff]  }
  0x18   :  { %970 = vmatpush1.bf16.msra.mxu1 %v1008_v8  ;;  %v1014_v14 = vld [vmem:[#allocation2 + $0x20] ss:$8 sps:$4 sm:$0xff]   ;;  %v1019_v15 = vld [vmem:[#allocation2 + $0x34] ss:$8 sps:$4 sm:$0xff]   ;;  %v1017_v16 = vld [vmem:[#allocation2 + $0x30] ss:$8 sps:$4 sm:$0xff]  }
  0x19   :  { %156 = vmatpush1.bf16.msra.mxu0 %v996_v4  ;;  %955 = vmatprep.subr.bf16.mxu1 %v1013_v10  ;;  %v1022_v17 = vld [vmem:[#allocation2 + $0x44] ss:$8 sps:$4 sm:$0xff]   ;;  %v1020_v19 = vld [vmem:[#allocation2 + $0x40] ss:$8 sps:$4 sm:$0xff]   ;;  %v1025_v20 = vld [vmem:[#allocation2 + $0x54] ss:$8 sps:$4 sm:$0xff]  }
  0x1a   :  { %157 = vmatprep.subr.bf16.mxu0 %v997_v5  ;;  %v1002_v18 = vld [vmem:[%s1305_s0 + $0x10] sm:$0xff]   ;;  %v1023_v21 = vld [vmem:[#allocation2 + $0x50] ss:$8 sps:$4 sm:$0xff]   ;;  %v1003_v23 = vld [vmem:[%s1305_s0 + $0x18] sm:$0xff]  }
  0x1b   :  { %v1028_v22 = vld [vmem:[#allocation2 + $0x64] ss:$8 sps:$4 sm:$0xff]   ;;  %v1026_v24 = vld [vmem:[#allocation2 + $0x60] ss:$8 sps:$4 sm:$0xff]   ;;  %v1031_v25 = vld [vmem:[#allocation2 + $0x74] ss:$8 sps:$4 sm:$0xff]  }
  0x1c   :  { %971 = vmatpush1.bf16.msra.mxu1 %v1011_v11  ;;  %v1029_v26 = vld [vmem:[#allocation2 + $0x70] ss:$8 sps:$4 sm:$0xff]   ;;  %v1034_v27 = vld [vmem:[#allocation2 + $0x84] ss:$8 sps:$4 sm:$0xff]   ;;  %v1032_v29 = vld [vmem:[#allocation2 + $0x80] ss:$8 sps:$4 sm:$0xff]  }
  0x1d   :  { %158 = vmatpush1.bf16.msra.mxu0 %v999_v6  ;;  %956 = vmatprep.subr.bf16.mxu1 %v1016_v12  ;;  %v1004_v28 = vld [vmem:[%s1305_s0 + $0x20] sm:$0xff]   ;;  %v1040_v32 = vld [vmem:[#allocation2 + $0xa4] ss:$8 sps:$4 sm:$0xff]   ;;  %v1005_v33 = vld [vmem:[%s1305_s0 + $0x28] sm:$0xff]  }
  0x1e   :  { %506 = vmatprep.subr.bf16.mxu0 %v1010_v9  ;;  %v1037_v30 = vld [vmem:[#allocation2 + $0x94] ss:$8 sps:$4 sm:$0xff]   ;;  %v1035_v31 = vld [vmem:[#allocation2 + $0x90] ss:$8 sps:$4 sm:$0xff]   ;;  %v1038_v34 = vld [vmem:[#allocation2 + $0xa0] ss:$8 sps:$4 sm:$0xff]  }
  0x1f   :  { %v1043_v35 = vld [vmem:[#allocation2 + $0xb4] ss:$8 sps:$4 sm:$0xff]   ;;  %v1041_v36 = vld [vmem:[#allocation2 + $0xb0] ss:$8 sps:$4 sm:$0xff]   ;;  %v1046_v37 = vld [vmem:[#allocation2 + $0xc4] ss:$8 sps:$4 sm:$0xff]  }
  0x20   :  { %882 = vmatmul.mubr.msk.bf16.vlgmr.msra.gmra.mrb[0].mxu0 %vm128_vm0, %v1000_v7  ;;  %972 = vmatpush1.bf16.msra.mxu1 %v1014_v14  ;;  %v1006_v38 = vld [vmem:[%s1305_s0 + $0x30] sm:$0xff]   ;;  %v1049_v40 = vld [vmem:[#allocation2 + $0xd4] ss:$8 sps:$4 sm:$0xff]   ;;  %v1047_v41 = vld [vmem:[#allocation2 + $0xd0] ss:$8 sps:$4 sm:$0xff]  }
  0x21   :  { %195 = vmatprep.mubr.bf16.mxu0 %v1107_v0  ;;  %507 = vmatpush1.bf16.msra.mxu0 %v1008_v8  ;;  %v1044_v39 = vld [vmem:[#allocation2 + $0xc0] ss:$8 sps:$4 sm:$0xff]   ;;  %v1052_v43 = vld [vmem:[#allocation2 + $0xe4] ss:$8 sps:$4 sm:$0xff]   ;;  %v1055_v45 = vld [vmem:[#allocation2 + $0xf4] ss:$8 sps:$4 sm:$0xff]  }
  0x22   :  { %508 = vmatprep.subr.bf16.mxu0 %v1013_v10  ;;  %957 = vmatprep.subr.bf16.mxu1 %v1019_v15  ;;  %v1007_v42 = vld [vmem:[%s1305_s0 + $0x38] sm:$0xff]   ;;  %v1053_v46 = vld [vmem:[#allocation2 + $0xf0] ss:$8 sps:$4 sm:$0xff]  }
  0x23   :  { %v1050_v44 = vld [vmem:[#allocation2 + $0xe0] ss:$8 sps:$4 sm:$0xff]  }
  0x24   :  { %973 = vmatpush1.bf16.msra.mxu1 %v1017_v16 }
  0x25   :  { %509 = vmatpush1.bf16.msra.mxu0 %v1011_v11  ;;  %958 = vmatprep.subr.bf16.mxu1 %v1022_v17 }
  0x26   :  { %510 = vmatprep.subr.bf16.mxu0 %v1016_v12 }
  0x28   :  { %883 = vmatmul.mubr.msk.bf16.gmra.mrb[4].mxu0 %vm128_vm0, %v1001_v13  ;;  %974 = vmatpush1.bf16.msra.mxu1 %v1020_v19 }
  0x29   :  { %205 = vmatprep.mubr.bf16.mxu0 %v1107_v0  ;;  %511 = vmatpush1.bf16.msra.mxu0 %v1014_v14 }
  0x2a   :  { %512 = vmatprep.subr.bf16.mxu0 %v1019_v15  ;;  %959 = vmatprep.subr.bf16.mxu1 %v1025_v20 }
  0x2c   :  { %975 = vmatpush1.bf16.msra.mxu1 %v1023_v21 }
  0x2d   :  { %513 = vmatpush1.bf16.msra.mxu0 %v1017_v16  ;;  %960 = vmatprep.subr.bf16.mxu1 %v1028_v22 }
  0x2e   :  { %514 = vmatprep.subr.bf16.mxu0 %v1022_v17 }
  0x30   :  { %884 = vmatmul.mubr.msk.bf16.gmra.mrb[8].mxu0 %vm128_vm0, %v1002_v18  ;;  %976 = vmatpush1.bf16.msra.mxu1 %v1026_v24 }
  0x31   :  { %215 = vmatprep.mubr.bf16.mxu0 %v1107_v0  ;;  %515 = vmatpush1.bf16.msra.mxu0 %v1020_v19 }
  0x32   :  { %516 = vmatprep.subr.bf16.mxu0 %v1025_v20  ;;  %961 = vmatprep.subr.bf16.mxu1 %v1031_v25 }
  0x34   :  { %977 = vmatpush1.bf16.msra.mxu1 %v1029_v26 }
  0x35   :  { %517 = vmatpush1.bf16.msra.mxu0 %v1023_v21  ;;  %962 = vmatprep.subr.bf16.mxu1 %v1034_v27 }
  0x36   :  { %518 = vmatprep.subr.bf16.mxu0 %v1028_v22 }
  0x38   :  { %885 = vmatmul.mubr.msk.bf16.gmra.mrb[12].mxu0 %vm128_vm0, %v1003_v23  ;;  %978 = vmatpush1.bf16.msra.mxu1 %v1032_v29 }
  0x39   :  { %225 = vmatprep.mubr.bf16.mxu0 %v1107_v0  ;;  %519 = vmatpush1.bf16.msra.mxu0 %v1026_v24 }
  0x3a   :  { %520 = vmatprep.subr.bf16.mxu0 %v1031_v25  ;;  %963 = vmatprep.subr.bf16.mxu1 %v1037_v30 }
  0x3c   :  { %979 = vmatpush1.bf16.msra.mxu1 %v1035_v31 }
  0x3d   :  { %521 = vmatpush1.bf16.msra.mxu0 %v1029_v26  ;;  %964 = vmatprep.subr.bf16.mxu1 %v1040_v32 }
  0x3e   :  { %522 = vmatprep.subr.bf16.mxu0 %v1034_v27 }
  0x40   :  { %886 = vmatmul.mubr.msk.bf16.gmra.mrb[16].mxu0 %vm128_vm0, %v1004_v28  ;;  %980 = vmatpush1.bf16.msra.mxu1 %v1038_v34 }
  0x41   :  { %235 = vmatprep.mubr.bf16.mxu0 %v1107_v0  ;;  %523 = vmatpush1.bf16.msra.mxu0 %v1032_v29 }
  0x42   :  { %524 = vmatprep.subr.bf16.mxu0 %v1037_v30  ;;  %965 = vmatprep.subr.bf16.mxu1 %v1043_v35 }
  0x44   :  { %981 = vmatpush1.bf16.msra.mxu1 %v1041_v36 }
  0x45   :  { %525 = vmatpush1.bf16.msra.mxu0 %v1035_v31  ;;  %966 = vmatprep.subr.bf16.mxu1 %v1046_v37 }
  0x46   :  { %526 = vmatprep.subr.bf16.mxu0 %v1040_v32 }
  0x48   :  { %887 = vmatmul.mubr.msk.bf16.gmra.mrb[20].mxu0 %vm128_vm0, %v1005_v33  ;;  %982 = vmatpush1.bf16.msra.mxu1 %v1044_v39 }
  0x49   :  { %245 = vmatprep.mubr.bf16.mxu0 %v1107_v0  ;;  %527 = vmatpush1.bf16.msra.mxu0 %v1038_v34 }
  0x4a   :  { %528 = vmatprep.subr.bf16.mxu0 %v1043_v35  ;;  %967 = vmatprep.subr.bf16.mxu1 %v1049_v40 }
  0x4c   :  { %983 = vmatpush1.bf16.msra.mxu1 %v1047_v41 }
  0x4d   :  { %529 = vmatpush1.bf16.msra.mxu0 %v1041_v36  ;;  %968 = vmatprep.subr.bf16.mxu1 %v1052_v43 }
  0x4e   :  { %530 = vmatprep.subr.bf16.mxu0 %v1046_v37 }
  0x50   :  { %888 = vmatmul.mubr.msk.bf16.gmra.mrb[24].mxu0 %vm128_vm0, %v1006_v38  ;;  %984 = vmatpush1.bf16.msra.mxu1 %v1050_v44 }
  0x51   :  { %255 = vmatprep.mubr.bf16.mxu0 %v1107_v0  ;;  %531 = vmatpush1.bf16.msra.mxu0 %v1044_v39 }
  0x52   :  { %532 = vmatprep.subr.bf16.mxu0 %v1049_v40  ;;  %969 = vmatprep.subr.bf16.mxu1 %v1055_v45 }
  0x54   :  { %985 = vmatpush1.bf16.msra.mxu1 %v1053_v46 }
  0x55   :  { %533 = vmatpush1.bf16.msra.mxu0 %v1047_v41 }
  0x56   :  { %534 = vmatprep.subr.bf16.mxu0 %v1052_v43 }
  0x58   :  { %889 = vmatmul.mubr.msk.bf16.gmra.mrb[28].mxu0 %vm128_vm0, %v1007_v42 }
  0x59   :  { %535 = vmatpush1.bf16.msra.mxu0 %v1050_v44 }
  0x5a   :  { %536 = vmatprep.subr.bf16.mxu0 %v1055_v45 }
  0x5d   :  { %537 = vmatpush1.bf16.msra.mxu0 %v1053_v46 }
  0xf3   :  { %v187_v47 = vpop.f32.mrb[0].mxu0 }
  0xf4   :  { %v189_v48 = vpop.f32.mrb[1].mxu0  ;;  %v266_v50 = vmax.f32 %v187_v47, 0.0 }
  0xf5   :  { %v191_v49 = vpop.f32.mrb[2].mxu0  ;;  %v267_v53 = vmax.f32 %v189_v48, 0.0 }
  0xf6   :  { %v268_v51 = vmax.f32 %v191_v49, 0.0  ;;  %v193_v52 = vpop.f32.mrb[3].mxu0 }
  0xf7   :  { %v269_v54 = vmax.f32 %v193_v52, 0.0 }
  0xf8   :  { %v298_v55 = vpack.c.bf16 %v268_v51, %v266_v50 }
  0xf9   :  { %v299_v56 = vpack.c.bf16 %v269_v54, %v267_v53 }
  0xfb   :  { %v197_v57 = vpop.f32.mrb[4].mxu0  ;;  %538 = vmatprep.mubr.bf16.mxu0 %v299_v56 }
  0xfc   :  { %v199_v58 = vpop.f32.mrb[5].mxu0  ;;  %539 = vmatmul.mubr.bf16.vlgmr.msra.gmra.mrb[32].mxu0 %v298_v55  ;;  %v270_v60 = vmax.f32 %v197_v57, 0.0 }
  0xfd   :  { %v201_v59 = vpop.f32.mrb[6].mxu0  ;;  %v271_v63 = vmax.f32 %v199_v58, 0.0 }
  0xfe   :  { %v272_v61 = vmax.f32 %v201_v59, 0.0  ;;  %v203_v62 = vpop.f32.mrb[7].mxu0 }
  0xff   :  { %v273_v0 = vmax.f32 %v203_v62, 0.0 }
 0x100   :  { %v300_v1 = vpack.c.bf16 %v272_v61, %v270_v60 }
 0x101   :  { %v301_v2 = vpack.c.bf16 %v273_v0, %v271_v63  ;;  %v621_v63 = vlaneseq }
 0x103   :  { %v207_v3 = vpop.f32.mrb[8].mxu0  ;;  %548 = vmatprep.mubr.bf16.mxu0 %v301_v2  ;;  %v622_v0 = vshrl.u32 %v621_v63, 7  ;;  %v619_v2 = vld [vmem:[%s1308_s3] sm:$0x3]  ;;  %s1108_s3 = smov [#allocation5]  }
 0x104   :  { %v209_v4 = vpop.f32.mrb[9].mxu0  ;;  %549 = vmatmul.mubr.bf16.gmra.mrb[36].mxu0 %v300_v1  ;;  %v274_v6 = vmax.f32 %v207_v3, 0.0 }
 0x105   :  { %v211_v5 = vpop.f32.mrb[10].mxu0  ;;  %v275_v9 = vmax.f32 %v209_v4, 0.0  ;;  %v623_v1 = vsub.s32 0, %v622_v0  ;;  %v627_v3 = vsub.s32 1, %v622_v0  ;;  %v663_v4 = vld [vmem:[%s1309_s4] sm:$0x3] }
 0x106   :  { %v276_v7 = vmax.f32 %v211_v5, 0.0  ;;  %v213_v8 = vpop.f32.mrb[11].mxu0  ;;  %s856_s4 = sshll.u32 %s1108_s3, 4  ;;  %s857_s4 = int_to_ptr.vmem [resolvable:$true] %s856_s4 }
 0x107   :  { %v277_v10 = vmax.f32 %v213_v8, 0.0  ;;  %v1218_v5 = vrot.slane %v619_v2, %v623_v1  ;;  %s1078_s2 = scalar_lea.vmem %s857_s4, 2048  ;;  %p1083_p9 = scmp.lt.s32.totalorder %s857_s4, %s857_s4 }
 0x108   :  { %v302_v11 = vpack.c.bf16 %v276_v7, %v274_v6  ;;  %v1220_v6 = vrot.slane %v619_v2, %v627_v3  ;;  %v1222_v7 = vrot.slane %v663_v4, %v623_v1  ;;  %p1079_p8 = scmp.ne.s32.totalorder %s857_s4, %s1078_s2  ;;  %p1084_p10 = scmp.lt.s32.totalorder %s1078_s2, %s1078_s2 }
 0x109   :  { %v303_v12 = vpack.c.bf16 %v277_v10, %v275_v9  ;;  %v1224_v9 = vrot.slane %v663_v4, %v627_v3 }
 0x10a   :  { %p1085_p11 = por %p1084_p10, %p1083_p9 }
 0x10b   :  { %v217_v13 = vpop.f32.mrb[12].mxu0  ;;  %558 = vmatprep.mubr.bf16.mxu0 %v303_v12 }
 0x10c   :  { %v219_v14 = vpop.f32.mrb[13].mxu0  ;;  %559 = vmatmul.mubr.bf16.gmra.mrb[40].mxu0 %v302_v11  ;;  %v278_v16 = vmax.f32 %v217_v13, 0.0  ;;  %p1086_p12 = pnand %p1085_p11, %p1079_p8 }
 0x10d   :  { %v221_v15 = vpop.f32.mrb[14].mxu0  ;;  %v279_v19 = vmax.f32 %v219_v14, 0.0 }
 0x10e   :  { %v280_v17 = vmax.f32 %v221_v15, 0.0  ;;  %v223_v18 = vpop.f32.mrb[15].mxu0 }
 0x10f   :  { %v281_v20 = vmax.f32 %v223_v18, 0.0 }
 0x110   :  { %v304_v21 = vpack.c.bf16 %v280_v17, %v278_v16 }
 0x111   :  { %v305_v22 = vpack.c.bf16 %v281_v20, %v279_v19 }
 0x113   :  { %v227_v23 = vpop.f32.mrb[16].mxu0  ;;  %568 = vmatprep.mubr.bf16.mxu1 %v305_v22 }
 0x114   :  { %v229_v24 = vpop.f32.mrb[17].mxu0  ;;  %569 = vmatmul.mubr.bf16.vlgmr.msra.gmra.mrb[0].mxu1 %v304_v21  ;;  %v282_v26 = vmax.f32 %v227_v23, 0.0 }
 0x115   :  { %v231_v25 = vpop.f32.mrb[18].mxu0  ;;  %v283_v29 = vmax.f32 %v229_v24, 0.0 }
 0x116   :  { %v284_v27 = vmax.f32 %v231_v25, 0.0  ;;  %v233_v28 = vpop.f32.mrb[19].mxu0 }
 0x117   :  { %v285_v30 = vmax.f32 %v233_v28, 0.0 }
 0x118   :  { %v306_v31 = vpack.c.bf16 %v284_v27, %v282_v26 }
 0x119   :  { %v307_v32 = vpack.c.bf16 %v285_v30, %v283_v29 }
 0x11b   :  { %v237_v33 = vpop.f32.mrb[20].mxu0  ;;  %578 = vmatprep.mubr.bf16.mxu1 %v307_v32 }
 0x11c   :  { %v239_v34 = vpop.f32.mrb[21].mxu0  ;;  %579 = vmatmul.mubr.bf16.gmra.mrb[4].mxu1 %v306_v31  ;;  %v286_v36 = vmax.f32 %v237_v33, 0.0 }
 0x11d   :  { %v241_v35 = vpop.f32.mrb[22].mxu0  ;;  %v287_v39 = vmax.f32 %v239_v34, 0.0 }
 0x11e   :  { %v288_v37 = vmax.f32 %v241_v35, 0.0  ;;  %v243_v38 = vpop.f32.mrb[23].mxu0 }
 0x11f   :  { %v289_v40 = vmax.f32 %v243_v38, 0.0 }
 0x120   :  { %v308_v41 = vpack.c.bf16 %v288_v37, %v286_v36 }
 0x121   :  { %v309_v42 = vpack.c.bf16 %v289_v40, %v287_v39 }
 0x123   :  { %v247_v43 = vpop.f32.mrb[24].mxu0  ;;  %588 = vmatprep.mubr.bf16.mxu1 %v309_v42 }
 0x124   :  { %v249_v44 = vpop.f32.mrb[25].mxu0  ;;  %589 = vmatmul.mubr.bf16.gmra.mrb[8].mxu1 %v308_v41  ;;  %v290_v46 = vmax.f32 %v247_v43, 0.0 }
 0x125   :  { %v251_v45 = vpop.f32.mrb[26].mxu0  ;;  %v291_v49 = vmax.f32 %v249_v44, 0.0 }
 0x126   :  { %v292_v47 = vmax.f32 %v251_v45, 0.0  ;;  %v253_v48 = vpop.f32.mrb[27].mxu0 }
 0x127   :  { %v293_v50 = vmax.f32 %v253_v48, 0.0 }
 0x128   :  { %v310_v51 = vpack.c.bf16 %v292_v47, %v290_v46 }
 0x129   :  { %v311_v52 = vpack.c.bf16 %v293_v50, %v291_v49 }
 0x12b   :  { %v257_v53 = vpop.f32.mrb[28].mxu0  ;;  %598 = vmatprep.mubr.bf16.mxu1 %v311_v52 }
 0x12c   :  { %v259_v54 = vpop.f32.mrb[29].mxu0  ;;  %599 = vmatmul.mubr.bf16.gmra.mrb[12].mxu1 %v310_v51  ;;  %v294_v56 = vmax.f32 %v257_v53, 0.0 }
 0x12d   :  { %v261_v55 = vpop.f32.mrb[30].mxu0  ;;  %v295_v59 = vmax.f32 %v259_v54, 0.0 }
 0x12e   :  { %v296_v57 = vmax.f32 %v261_v55, 0.0  ;;  %v263_v58 = vpop.f32.mrb[31].mxu0 }
 0x12f   :  { %v297_v60 = vmax.f32 %v263_v58, 0.0 }
 0x130   :  { %v312_v61 = vpack.c.bf16 %v296_v57, %v294_v56 }
 0x131   :  { %v313_v62 = vpack.c.bf16 %v297_v60, %v295_v59 }
 0x133   :  { %608 = vmatprep.mubr.bf16.mxu1 %v313_v62 }
 0x134   :  { %609 = vmatmul.mubr.bf16.gmra.mrb[16].mxu1 %v312_v61 }
 0x1cf   :  { %v540_v8 = vpop.f32.mrb[32].mxu0 }
 0x1d0   :  { %v631_v10 = vmul.f32 %v1218_v5, %v540_v8  ;;  %v542_v11 = vpop.f32.mrb[33].mxu0 }
 0x1d1   :  { %v632_v12 = vmul.f32 %v1220_v6, %v542_v11  ;;  %v544_v13 = vpop.f32.mrb[34].mxu0 }
 0x1d2   :  { %v675_v14 = vadd.f32 %v1222_v7, %v631_v10  ;;  %v633_v15 = vmul.f32 %v1218_v5, %v544_v13  ;;  %v546_v16 = vpop.f32.mrb[35].mxu0 }
 0x1d3   :  { %v676_v17 = vadd.f32 %v1224_v9, %v632_v12  ;;  %v634_v18 = vmul.f32 %v1220_v6, %v546_v16 }
 0x1d4   :  { %v707_v19 = vmax.f32 %v675_v14, 0.0  ;;  %v677_v20 = vadd.f32 %v1222_v7, %v633_v15 }
 0x1d5   :  { %v708_v21 = vmax.f32 %v676_v17, 0.0  ;;  %v678_v22 = vadd.f32 %v1224_v9, %v634_v18 }
 0x1d6   :  { %v709_v23 = vmax.f32 %v677_v20, 0.0 }
 0x1d7   :  { %v938_v24 = vpack.c.bf16 %v708_v21, %v707_v19  ;;  %v710_v25 = vmax.f32 %v678_v22, 0.0  ;;  %v550_v26 = vpop.f32.mrb[36].mxu0 }
 0x1d8   :  { %v635_v27 = vmul.f32 %v1218_v5, %v550_v26  ;;  %v552_v28 = vpop.f32.mrb[37].mxu0 }
 0x1d9   :  { %835 = vst [vmem:[#allocation5] sm:$0xff] %v938_v24  ;;  %v939_v29 = vpack.c.bf16 %v710_v25, %v709_v23  ;;  %v636_v30 = vmul.f32 %v1220_v6, %v552_v28  ;;  %v554_v31 = vpop.f32.mrb[38].mxu0 }
 0x1da   :  { %v679_v32 = vadd.f32 %v1222_v7, %v635_v27  ;;  %v637_v33 = vmul.f32 %v1218_v5, %v554_v31  ;;  %v556_v34 = vpop.f32.mrb[39].mxu0 }
 0x1db   :  { %836 = vst [vmem:[#allocation5 + $0x8] sm:$0xff] %v939_v29  ;;  %v680_v35 = vadd.f32 %v1224_v9, %v636_v30  ;;  %v638_v36 = vmul.f32 %v1220_v6, %v556_v34 }
 0x1dc   :  { %v711_v37 = vmax.f32 %v679_v32, 0.0  ;;  %v681_v38 = vadd.f32 %v1222_v7, %v637_v33 }
 0x1dd   :  { %v712_v39 = vmax.f32 %v680_v35, 0.0  ;;  %v682_v40 = vadd.f32 %v1224_v9, %v638_v36 }
 0x1de   :  { %v713_v41 = vmax.f32 %v681_v38, 0.0 }
 0x1df   :  { %v940_v42 = vpack.c.bf16 %v712_v39, %v711_v37  ;;  %v714_v43 = vmax.f32 %v682_v40, 0.0  ;;  %v560_v44 = vpop.f32.mrb[40].mxu0 }
 0x1e0   :  { %v639_v45 = vmul.f32 %v1218_v5, %v560_v44  ;;  %v562_v46 = vpop.f32.mrb[41].mxu0 }
 0x1e1   :  { %837 = vst [vmem:[#allocation5 + $0x10] sm:$0xff] %v940_v42  ;;  %v941_v47 = vpack.c.bf16 %v714_v43, %v713_v41  ;;  %v640_v48 = vmul.f32 %v1220_v6, %v562_v46  ;;  %v564_v49 = vpop.f32.mrb[42].mxu0 }
 0x1e2   :  { %v683_v50 = vadd.f32 %v1222_v7, %v639_v45  ;;  %v641_v51 = vmul.f32 %v1218_v5, %v564_v49  ;;  %v566_v52 = vpop.f32.mrb[43].mxu0 }
 0x1e3   :  { %838 = vst [vmem:[#allocation5 + $0x18] sm:$0xff] %v941_v47  ;;  %v684_v53 = vadd.f32 %v1224_v9, %v640_v48  ;;  %v642_v54 = vmul.f32 %v1220_v6, %v566_v52 }
 0x1e4   :  { %v715_v55 = vmax.f32 %v683_v50, 0.0  ;;  %v685_v56 = vadd.f32 %v1222_v7, %v641_v51 }
 0x1e5   :  { %v716_v57 = vmax.f32 %v684_v53, 0.0  ;;  %v686_v58 = vadd.f32 %v1224_v9, %v642_v54 }
 0x1e6   :  { %v717_v59 = vmax.f32 %v685_v56, 0.0 }
 0x1e7   :  { %v942_v60 = vpack.c.bf16 %v716_v57, %v715_v55  ;;  %v718_v61 = vmax.f32 %v686_v58, 0.0  ;;  %v570_v62 = vpop.f32.mrb[0].mxu1 }
 0x1e8   :  { %v643_v63 = vmul.f32 %v1218_v5, %v570_v62  ;;  %v572_v0 = vpop.f32.mrb[1].mxu1 }
 0x1e9   :  { %839 = vst [vmem:[#allocation5 + $0x20] sm:$0xff] %v942_v60  ;;  %v943_v1 = vpack.c.bf16 %v718_v61, %v717_v59  ;;  %v644_v2 = vmul.f32 %v1220_v6, %v572_v0  ;;  %v574_v3 = vpop.f32.mrb[2].mxu1 }
 0x1ea   :  { %v687_v4 = vadd.f32 %v1222_v7, %v643_v63  ;;  %v645_v8 = vmul.f32 %v1218_v5, %v574_v3  ;;  %v576_v10 = vpop.f32.mrb[3].mxu1 }
 0x1eb   :  { %840 = vst [vmem:[#allocation5 + $0x28] sm:$0xff] %v943_v1  ;;  %v688_v11 = vadd.f32 %v1224_v9, %v644_v2  ;;  %v646_v12 = vmul.f32 %v1220_v6, %v576_v10 }
 0x1ec   :  { %v719_v13 = vmax.f32 %v687_v4, 0.0  ;;  %v689_v14 = vadd.f32 %v1222_v7, %v645_v8 }
 0x1ed   :  { %v720_v15 = vmax.f32 %v688_v11, 0.0  ;;  %v690_v16 = vadd.f32 %v1224_v9, %v646_v12 }
 0x1ee   :  { %v721_v17 = vmax.f32 %v689_v14, 0.0 }
 0x1ef   :  { %v944_v18 = vpack.c.bf16 %v720_v15, %v719_v13  ;;  %v722_v19 = vmax.f32 %v690_v16, 0.0  ;;  %v580_v20 = vpop.f32.mrb[4].mxu1 }
 0x1f0   :  { %v647_v21 = vmul.f32 %v1218_v5, %v580_v20  ;;  %v582_v22 = vpop.f32.mrb[5].mxu1 }
 0x1f1   :  { %841 = vst [vmem:[#allocation5 + $0x30] sm:$0xff] %v944_v18  ;;  %v945_v23 = vpack.c.bf16 %v722_v19, %v721_v17  ;;  %v648_v24 = vmul.f32 %v1220_v6, %v582_v22  ;;  %v584_v25 = vpop.f32.mrb[6].mxu1 }
 0x1f2   :  { %v691_v26 = vadd.f32 %v1222_v7, %v647_v21  ;;  %v649_v27 = vmul.f32 %v1218_v5, %v584_v25  ;;  %v586_v28 = vpop.f32.mrb[7].mxu1 }
 0x1f3   :  { %842 = vst [vmem:[#allocation5 + $0x38] sm:$0xff] %v945_v23  ;;  %v692_v29 = vadd.f32 %v1224_v9, %v648_v24  ;;  %v650_v30 = vmul.f32 %v1220_v6, %v586_v28 }
 0x1f4   :  { %v723_v31 = vmax.f32 %v691_v26, 0.0  ;;  %v693_v32 = vadd.f32 %v1222_v7, %v649_v27 }
 0x1f5   :  { %v724_v33 = vmax.f32 %v692_v29, 0.0  ;;  %v694_v34 = vadd.f32 %v1224_v9, %v650_v30 }
 0x1f6   :  { %v725_v35 = vmax.f32 %v693_v32, 0.0 }
 0x1f7   :  { %v946_v36 = vpack.c.bf16 %v724_v33, %v723_v31  ;;  %v726_v37 = vmax.f32 %v694_v34, 0.0  ;;  %v590_v38 = vpop.f32.mrb[8].mxu1 }
 0x1f8   :  { %v651_v39 = vmul.f32 %v1218_v5, %v590_v38  ;;  %v592_v40 = vpop.f32.mrb[9].mxu1 }
 0x1f9   :  { %843 = vst [vmem:[#allocation5 + $0x40] sm:$0xff] %v946_v36  ;;  %v947_v41 = vpack.c.bf16 %v726_v37, %v725_v35  ;;  %v652_v42 = vmul.f32 %v1220_v6, %v592_v40  ;;  %v594_v43 = vpop.f32.mrb[10].mxu1 }
 0x1fa   :  { %v695_v44 = vadd.f32 %v1222_v7, %v651_v39  ;;  %v653_v45 = vmul.f32 %v1218_v5, %v594_v43  ;;  %v596_v46 = vpop.f32.mrb[11].mxu1 }
 0x1fb   :  { %844 = vst [vmem:[#allocation5 + $0x48] sm:$0xff] %v947_v41  ;;  %v696_v47 = vadd.f32 %v1224_v9, %v652_v42  ;;  %v654_v48 = vmul.f32 %v1220_v6, %v596_v46 }
 0x1fc   :  { %v727_v49 = vmax.f32 %v695_v44, 0.0  ;;  %v697_v50 = vadd.f32 %v1222_v7, %v653_v45 }
 0x1fd   :  { %v728_v51 = vmax.f32 %v696_v47, 0.0  ;;  %v698_v52 = vadd.f32 %v1224_v9, %v654_v48 }
 0x1fe   :  { %v729_v53 = vmax.f32 %v697_v50, 0.0 }
 0x1ff   :  { %v948_v54 = vpack.c.bf16 %v728_v51, %v727_v49  ;;  %v730_v55 = vmax.f32 %v698_v52, 0.0  ;;  %v600_v56 = vpop.f32.mrb[12].mxu1 }
 0x200   :  { %v655_v57 = vmul.f32 %v1218_v5, %v600_v56  ;;  %v602_v58 = vpop.f32.mrb[13].mxu1 }
 0x201   :  { %845 = vst [vmem:[#allocation5 + $0x50] sm:$0xff] %v948_v54  ;;  %v949_v59 = vpack.c.bf16 %v730_v55, %v729_v53  ;;  %v656_v60 = vmul.f32 %v1220_v6, %v602_v58  ;;  %v604_v61 = vpop.f32.mrb[14].mxu1 }
 0x202   :  { %v699_v62 = vadd.f32 %v1222_v7, %v655_v57  ;;  %v657_v63 = vmul.f32 %v1218_v5, %v604_v61  ;;  %v606_v0 = vpop.f32.mrb[15].mxu1 }
 0x203   :  { %846 = vst [vmem:[#allocation5 + $0x58] sm:$0xff] %v949_v59  ;;  %v700_v1 = vadd.f32 %v1224_v9, %v656_v60  ;;  %v658_v2 = vmul.f32 %v1220_v6, %v606_v0 }
 0x204   :  { %v731_v3 = vmax.f32 %v699_v62, 0.0  ;;  %v701_v4 = vadd.f32 %v1222_v7, %v657_v63 }
 0x205   :  { %v732_v8 = vmax.f32 %v700_v1, 0.0  ;;  %v702_v10 = vadd.f32 %v1224_v9, %v658_v2 }
 0x206   :  { %v733_v11 = vmax.f32 %v701_v4, 0.0 }
 0x207   :  { %v950_v12 = vpack.c.bf16 %v732_v8, %v731_v3  ;;  %v734_v13 = vmax.f32 %v702_v10, 0.0  ;;  %v610_v14 = vpop.f32.mrb[16].mxu1 }
 0x208   :  { %v659_v15 = vmul.f32 %v1218_v5, %v610_v14  ;;  %v612_v16 = vpop.f32.mrb[17].mxu1 }
 0x209   :  { %847 = vst [vmem:[#allocation5 + $0x60] sm:$0xff] %v950_v12  ;;  %v951_v17 = vpack.c.bf16 %v734_v13, %v733_v11  ;;  %v660_v18 = vmul.f32 %v1220_v6, %v612_v16  ;;  %v614_v19 = vpop.f32.mrb[18].mxu1 }
 0x20a   :  { %v703_v20 = vadd.f32 %v1222_v7, %v659_v15  ;;  %v661_v21 = vmul.f32 %v1218_v5, %v614_v19  ;;  %v616_v22 = vpop.f32.mrb[19].mxu1 }
 0x20b   :  { %848 = vst [vmem:[#allocation5 + $0x68] sm:$0xff] %v951_v17  ;;  %v704_v23 = vadd.f32 %v1224_v9, %v660_v18  ;;  %v662_v24 = vmul.f32 %v1220_v6, %v616_v22 }
 0x20c   :  { %v735_v25 = vmax.f32 %v703_v20, 0.0  ;;  %v705_v26 = vadd.f32 %v1222_v7, %v661_v21 }
 0x20d   :  { %v736_v27 = vmax.f32 %v704_v23, 0.0  ;;  %v706_v28 = vadd.f32 %v1224_v9, %v662_v24 }
 0x20e   :  { %v737_v29 = vmax.f32 %v705_v26, 0.0 }
 0x20f   :  { %v952_v30 = vpack.c.bf16 %v736_v27, %v735_v25  ;;  %v738_v31 = vmax.f32 %v706_v28, 0.0 }
 0x211   :  { %849 = vst [vmem:[#allocation5 + $0x70] sm:$0xff] %v952_v30  ;;  %v953_v32 = vpack.c.bf16 %v738_v31, %v737_v29 }
 0x213   :  { %850 = vst [vmem:[#allocation5 + $0x78] sm:$0xff] %v953_v32 }
 0x214   :  { %1089 = shalt.err (!%p1086_p12)
}
 0x215   :  { %s1090_s15 = scalar_lea.hbm %s1310_s5, 2048 }
 0x216   :  { %p1091_p13 = scmp.ne.s32.totalorder %s1310_s5, %s1090_s15  ;;  %p1094_p0 = scmp.lt.u32.totalorder %s1090_s15, %s1310_s5 }
 0x218   :  { %p1096_p1 = pnand %p1094_p0, %p1091_p13 }
 0x21a   :  { %1099 = shalt.err (!%p1096_p1)
}
 0x21b   :  { %862 = dma.vmem_to_hbm [thread:$0]  %s857_s4, 2048, %s1310_s5, [#allocation4], %s1105_s28, %s1105_s28, %s1106_s29  }
 0x21c   :  { %1102 = dma.done.wait [#allocation4], 2048  }
 0x21d   :  { %1103 = vsyncadd [#allocation4], 4294965248 }
 0x21e   :  { %866 = vsyncpa [#allocation3], 1 }
 0x21f   :  { %867 = vsyncpa [#allocation4], 1 }

</bundles_post_ra>
